<compile_context>
chip_gen: v7x
topology: tpu7x:2x2x1
jax: 0.10.0
libtpu: 0.0.40
codegen_flags: <defaults>
</compile_context>

<pallas_src>
import functools

import jax
import jax.numpy as jnp
from jax.experimental import pallas as pl
from jax.experimental.pallas import tpu as pltpu


# ---------------------------------------------------------------------------
# Helpers
# ---------------------------------------------------------------------------
def _round_up(v, m):
    return ((v + m - 1) // m) * m


def _vmem_limit_bytes():
    # ~75% of physical VMEM, capped: ~48 MiB on v7x (64 MiB part),
    # ~96 MiB on v5e/v6e (128 MiB parts). Conservative fallback if the query
    # is unavailable.
    try:
        cap = int(pltpu.get_tpu_info().vmem_capacity_bytes)
    except Exception:
        cap = 64 * 1024 * 1024
    return int(min(cap * 3 // 4, 100 * 1024 * 1024))


def _pick_row_tile(bn, d, t_pad, in_itemsize, out_itemsize, vmem_limit):
    """Stage-1 row tile: as large as the VMEM budget allows, capped at 2048."""
    per_row = (d * in_itemsize + t_pad * out_itemsize) * 2      # dbl-buffered x + out
    weight_bytes = (d * t_pad * in_itemsize + t_pad * 4) * 2    # dbl-buffered w + bias
    budget = max(vmem_limit - weight_bytes, vmem_limit // 4)
    tm = int(budget // max(per_row, 1))
    tm = max(min(tm, 2048), 8)
    if tm >= bn:
        return bn                                # full extent: always legal
    return max((tm // 8) * 8, 8)                 # tiled: keep a multiple of 8


# ---------------------------------------------------------------------------
# Stage 1: fused Q/K/V projection  (one big matmul instead of three small ones)
# ---------------------------------------------------------------------------
def _qkv_proj_kernel(x_ref, w_ref, b_ref, o_ref):
    # x_ref: (tm, D), w_ref: (D, T_pad), b_ref: (1, T_pad) f32, o_ref: (tm, T_pad)
    acc = jnp.dot(x_ref[...], w_ref[...], preferred_element_type=jnp.float32)
    o_ref[...] = (acc + b_ref[...]).astype(o_ref.dtype)


# ---------------------------------------------------------------------------
# Stage 2: per-batch multi-head "efficient attention" + fused reprojection
# ---------------------------------------------------------------------------
def _attention_kernel(k_ref, q_ref, v_ref, wrt_ref, br_ref, o_ref, att_ref, *,
                      head_count, mxu_dtype):
    # Squeezed batch dim:
    #   k_ref/q_ref: (KC, N)   v_ref: (VC, N)
    #   wrt_ref: (VC, D_pad)   br_ref: (1, D_pad) f32
    #   o_ref:  (N, D_pad)     att_ref (VMEM scratch): (VC, N) f32
    k = k_ref[...].astype(jnp.float32)
    q = q_ref[...].astype(jnp.float32)
    v = v_ref[...]

    kc, n = k.shape
    vc = v.shape[0]
    hkc = kc // head_count
    hvc = vc // head_count

    for h in range(head_count):  # head_count is small; static unroll
        kh = k[h * hkc:(h + 1) * hkc, :]               # (hkc, N)
        qh = q[h * hkc:(h + 1) * hkc, :]               # (hkc, N)
        vh = v[h * hvc:(h + 1) * hvc, :]               # (hvc, N)

        # keys: softmax over tokens (last axis) — keep the map UNnormalized,
        # denominator handled via an approx (EUP) reciprocal below.
        ke = jnp.exp(kh - jnp.max(kh, axis=-1, keepdims=True))               # (hkc, N)
        inv_l = pl.reciprocal(jnp.sum(ke, axis=-1, keepdims=True),
                              approx=True)                                   # (hkc, 1)

        # queries: softmax over head channels (axis 0); its denominator is
        # applied to the (hvc, N) attended map AFTER the dot (smaller map).
        qe = jnp.exp(qh - jnp.max(qh, axis=0, keepdims=True))                # (hkc, N)
        inv_s = pl.reciprocal(jnp.sum(qe, axis=0, keepdims=True),
                              approx=True)                                   # (1, N)

        # Fold the key-softmax denominator into the query map (one multiply,
        # no divides anywhere in the softmax path).
        qn = qe * inv_l                                                      # (hkc, N)

        # context^T = value @ key_map^T -> (hvc, hkc)   (A @ B^T on the MXU)
        ctx_t = jnp.einsum('vn,kn->vk',
                           vh.astype(mxu_dtype), ke.astype(mxu_dtype),
                           preferred_element_type=jnp.float32)
        # attended = context^T @ query_map -> (hvc, N)
        att_h = jnp.dot(ctx_t.astype(mxu_dtype), qn.astype(mxu_dtype),
                        preferred_element_type=jnp.float32)
        att_ref[h * hvc:(h + 1) * hvc, :] = att_h * inv_s                    # (hvc, N)

    # Single fused reprojection: one (N, VC) x (VC, D_pad) MXU matmul, output
    # produced directly in (N, D_pad); only one small (VC, N) transpose.
    att_t = att_ref[...].T                                                   # (N, VC) f32
    o_ref[...] = (
        jnp.dot(att_t.astype(mxu_dtype), wrt_ref[...],
                preferred_element_type=jnp.float32)
        + br_ref[...]
    ).astype(o_ref.dtype)


# ---------------------------------------------------------------------------
# Wrapper
# ---------------------------------------------------------------------------
def fuse_efficient_attention_forward(x, params, *, compute_dtype=jnp.float32):
    """x: (B, N, D).  Returns (B, N, D) float32, matching the PyTorch module.

    compute_dtype=jnp.bfloat16 uses bf16 MXU operands (f32 accumulation and
    f32 softmax math) — the recommended production setting on v6e/v7x.
    """
    B, N, D = x.shape
    wk, bk = params["wk"], params["bk"]           # (KC, D), (KC,)
    wq, bq = params["wq"], params["bq"]           # (KC, D), (KC,)
    wv, bv = params["wv"], params["bv"]           # (VC, D), (VC,)
    wr, br = params["wr"], params["br"]           # (D, VC), (D,)
    H = params["head_count"]
    KC, VC = wk.shape[0], wv.shape[0]
    if KC % H or VC % H:
        raise ValueError("head_count must divide key_channels and value_channels")

    T = 2 * KC + VC
    T_pad = _round_up(T, 128)     # lane-dense stage-1 output (unmasked stores)
    D_pad = _round_up(D, 128)     # lane-dense stage-2 output

    vmem_limit = _vmem_limit_bytes()
    cparams = pltpu.CompilerParams(
        dimension_semantics=("parallel",),
        vmem_limit_bytes=vmem_limit,
    )

    # ---- Stage 1: fused QKV projection --------------------------------------
    BN = B * N
    x2d = x.reshape(BN, D).astype(compute_dtype)
    w_cat = jnp.concatenate([wk, wq, wv], axis=0).T.astype(jnp.float32)   # (D, T)
    b_cat = jnp.concatenate([bk, bq, bv], axis=0).astype(jnp.float32)     # (T,)
    if T_pad != T:
        w_cat = jnp.pad(w_cat, ((0, 0), (0, T_pad - T)))
        b_cat = jnp.pad(b_cat, (0, T_pad - T))
    w_cat = w_cat.astype(compute_dtype)
    b_cat = b_cat[None, :]                                                # f32 (1, T_pad)

    itemsize = jnp.dtype(compute_dtype).itemsize
    tm = _pick_row_tile(BN, D, T_pad, itemsize, itemsize, vmem_limit)

    # TODO(synk): single-buffer the grid-invariant weight blocks
    # (pipeline_mode=pl.Buffered(1)) to save a VMEM copy on v7x's 64 MiB part.
    qkv = pl.pallas_call(
        _qkv_proj_kernel,
        out_shape=jax.ShapeDtypeStruct((BN, T_pad), compute_dtype),
        grid=(pl.cdiv(BN, tm),),
        in_specs=[
            pl.BlockSpec((tm, D), lambda i: (i, 0)),
            pl.BlockSpec((D, T_pad), lambda i: (0, 0)),
            pl.BlockSpec((1, T_pad), lambda i: (0, 0)),
        ],
        out_specs=pl.BlockSpec((tm, T_pad), lambda i: (i, 0)),
        compiler_params=cparams,
    )(x2d, w_cat, b_cat)

    # Layout plumbing between the two calls (pure XLA): column split plus the
    # module's row-major (B, N, C) -> (B, C, N) reshape — a reshape, NOT a
    # transpose, exactly what the PyTorch code does.
    # TODO(synk): on v5e this qkv HBM round trip could be removed by fusing
    # stage 1 into stage 2 (per-batch in-kernel projection + VMEM reshape).
    k_r = qkv[:, :KC].reshape(B, KC, N)
    q_r = qkv[:, KC:2 * KC].reshape(B, KC, N)
    v_r = qkv[:, 2 * KC:2 * KC + VC].reshape(B, VC, N)

    # ---- Stage 2: per-batch attention + fused reprojection ------------------
    wrt = wr.T.astype(jnp.float32)                # (VC, D)
    brp = br.astype(jnp.float32)                  # (D,)
    if D_pad != D:
        wrt = jnp.pad(wrt, ((0, 0), (0, D_pad - D)))
        brp = jnp.pad(brp, (0, D_pad - D))
    wrt = wrt.astype(compute_dtype)
    brp = brp[None, :]                            # f32 (1, D_pad)

    # TODO(synk): two-phase N-tiling of stage 2 (pass A: online key-softmax
    # stats + per-head contexts; pass B: per-tile query softmax, attended and
    # reprojection) is required for very long sequences on v7x's 64 MiB VMEM.
    # TODO(synk): when B < number of TensorCores (v7x megacore), add heads or
    # N tiles as an extra "parallel" grid axis.
    kern = functools.partial(_attention_kernel, head_count=H,
                             mxu_dtype=compute_dtype)
    out = pl.pallas_call(
        kern,
        out_shape=jax.ShapeDtypeStruct((B, N, D_pad), jnp.float32),
        grid=(B,),
        in_specs=[
            pl.BlockSpec((None, KC, N), lambda b: (b, 0, 0)),
            pl.BlockSpec((None, KC, N), lambda b: (b, 0, 0)),
            pl.BlockSpec((None, VC, N), lambda b: (b, 0, 0)),
            pl.BlockSpec((VC, D_pad), lambda b: (0, 0)),
            pl.BlockSpec((1, D_pad), lambda b: (0, 0)),
        ],
        out_specs=pl.BlockSpec((None, N, D_pad), lambda b: (b, 0, 0)),
        scratch_shapes=[pltpu.VMEM((VC, N), jnp.float32)],
        compiler_params=cparams,
    )(k_r, q_r, v_r, wrt, brp)

    if D_pad != D:
        out = out[:, :, :D]
    return out


# ---------------------------------------------------------------------------
# Pure-JAX reference mirroring the PyTorch forward (for correctness check)
# ---------------------------------------------------------------------------
def fuse_efficient_attention_reference(x, params):
    B, N, D = x.shape
    H = params["head_count"]
    KC = params["wk"].shape[0]
    VC = params["wv"].shape[0]
    keys = x @ params["wk"].T + params["bk"]
    queries = x @ params["wq"].T + params["bq"]
    values = x @ params["wv"].T + params["bv"]
    keys = keys.reshape(B, KC, N)
    queries = queries.reshape(B, KC, N)
    values = values.reshape(B, VC, N)
    hkc, hvc = KC // H, VC // H
    attended_values = []
    for i in range(H):
        key = jax.nn.softmax(keys[:, i * hkc:(i + 1) * hkc, :], axis=2)
        query = jax.nn.softmax(queries[:, i * hkc:(i + 1) * hkc, :], axis=1)
        value = values[:, i * hvc:(i + 1) * hvc, :]
        context = jnp.einsum('bkn,bvn->bkv', key, value)
        attended = jnp.einsum('bkv,bkn->bvn', context, query)
        attended_values.append(attended)
    agg = jnp.concatenate(attended_values, axis=1)        # (B, VC, N)
    agg = jnp.transpose(agg, (0, 2, 1))                   # (B, N, VC)
    return agg @ params["wr"].T + params["br"]


def init_params(key, in_channels, key_channels, value_channels, head_count):
    ks = jax.random.split(key, 8)

    def lin(kw, kb, fan_in, fan_out):
        bound = 1.0 / jnp.sqrt(fan_in)
        w = jax.random.uniform(kw, (fan_out, fan_in), jnp.float32, -bound, bound)
        b = jax.random.uniform(kb, (fan_out,), jnp.float32, -bound, bound)
        return w, b

    wk, bk = lin(ks[0], ks[1], in_channels, key_channels)
    wq, bq = lin(ks[2], ks[3], in_channels, key_channels)
    wv, bv = lin(ks[4], ks[5], in_channels, value_channels)
    wr, br = lin(ks[6], ks[7], value_channels, in_channels)
    return dict(wk=wk, bk=bk, wq=wq, bq=bq, wv=wv, bv=bv, wr=wr, br=br,
                head_count=head_count)


if __name__ == "__main__":
    # Small shapes consistent with the module: x [B, N, D].
    B, N, D = 2, 16, 32
    KEY_CH, VAL_CH, HEADS = 32, 32, 4

    key = jax.random.PRNGKey(0)
    kp, kx = jax.random.split(key)
    params = init_params(kp, D, KEY_CH, VAL_CH, HEADS)
    x = jax.random.normal(kx, (B, N, D), jnp.float32)

    ref = jax.block_until_ready(fuse_efficient_attention_reference(x, params))

    # f32 path (approx EUP reciprocals in the softmax denominators -> slightly
    # looser tolerance than pure f32).
    out = jax.block_until_ready(fuse_efficient_attention_forward(x, params))
    assert out.shape == (B, N, D)
    err = jnp.max(jnp.abs(out - ref))
    assert jnp.allclose(out, ref, atol=5e-3, rtol=1e-2), f"f32 max abs err {err}"

    # bf16 MXU-operand path (the v6e/v7x production setting).
    out_bf = jax.block_until_ready(
        fuse_efficient_attention_forward(x, params, compute_dtype=jnp.bfloat16))
    err_bf = jnp.max(jnp.abs(out_bf - ref))
    assert jnp.allclose(out_bf, ref, atol=5e-2, rtol=5e-2), f"bf16 max abs err {err_bf}"

    print("KERNEL_OK")
</pallas_src>

<mosaic_0001>
module attributes {stable_mosaic.version = 11 : i64} {
  func.func @_qkv_proj_kernel(%arg0: i32, %arg1: memref<32x32xf32, #tpu.memory_space<vmem>>, %arg2: memref<32x128xf32, #tpu.memory_space<vmem>>, %arg3: memref<1x128xf32, #tpu.memory_space<vmem>>, %arg4: memref<32x128xf32, #tpu.memory_space<vmem>>) attributes {dimension_semantics = [#tpu.dimension_semantics<parallel>], iteration_bounds = array<i64: 1>, scalar_prefetch = 0 : i64, scratch_operands = 0 : i64, tpu.core_type = #tpu.core_type<tc>, window_params = [{transform_indices = @transform_0, window_bounds = array<i64: 32, 32>}, {pipeline_mode = #tpu.pipeline_mode<synchronous>, transform_indices = @transform_1, window_bounds = array<i64: 32, 128>}, {pipeline_mode = #tpu.pipeline_mode<synchronous>, transform_indices = @transform_2, window_bounds = array<i64: 1, 128>}, {transform_indices = @transform_3, window_bounds = array<i64: 32, 128>}]} {
    %c0 = arith.constant 0 : index
    %c0_0 = arith.constant 0 : index
    %0 = vector.load %arg1[%c0, %c0_0] : memref<32x32xf32, #tpu.memory_space<vmem>>, vector<32x32xf32>
    %c0_1 = arith.constant 0 : index
    %c0_2 = arith.constant 0 : index
    %1 = vector.load %arg2[%c0_1, %c0_2] : memref<32x128xf32, #tpu.memory_space<vmem>>, vector<32x128xf32>
    %cst = arith.constant dense<0.000000e+00> : vector<32x128xf32>
    %2 = tpu.matmul %0, %1, %cst {dimension_numbers = #tpu.dot_dimension_numbers<[1], [0], [0], [1], [0, 0, 1, 1], [], []>} : vector<32x32xf32>, vector<32x128xf32>, vector<32x128xf32> -> vector<32x128xf32>
    %c0_3 = arith.constant 0 : index
    %c0_4 = arith.constant 0 : index
    %3 = vector.load %arg3[%c0_3, %c0_4] : memref<1x128xf32, #tpu.memory_space<vmem>>, vector<1x128xf32>
    %4 = vector.broadcast %3 : vector<1x128xf32> to vector<32x128xf32>
    %5 = arith.addf %2, %4 : vector<32x128xf32>
    %c0_5 = arith.constant 0 : index
    %c0_6 = arith.constant 0 : index
    %6 = vector.load %arg4[%c0_5, %c0_6] : memref<32x128xf32, #tpu.memory_space<vmem>>, vector<32x128xf32>
    tpu.vector_store %arg4[%c0_5, %c0_6], %5 {strides = array<i32>} : memref<32x128xf32, #tpu.memory_space<vmem>>, vector<32x128xf32>,
    return
  }
  func.func @transform_0(%arg0: i32) -> (i32, i32) {
    %c0_i32 = arith.constant 0 : i32
    %c0_i32_0 = arith.constant 0 : i32
    return %arg0, %c0_i32 : i32, i32
  }
  func.func @transform_1(%arg0: i32) -> (i32, i32) {
    %c0_i32 = arith.constant 0 : i32
    %c0_i32_0 = arith.constant 0 : i32
    %c0_i32_1 = arith.constant 0 : i32
    return %c0_i32, %c0_i32_0 : i32, i32
  }
  func.func @transform_2(%arg0: i32) -> (i32, i32) {
    %c0_i32 = arith.constant 0 : i32
    %c0_i32_0 = arith.constant 0 : i32
    %c0_i32_1 = arith.constant 0 : i32
    return %c0_i32, %c0_i32_0 : i32, i32
  }
  func.func @transform_3(%arg0: i32) -> (i32, i32) {
    %c0_i32 = arith.constant 0 : i32
    %c0_i32_0 = arith.constant 0 : i32
    return %arg0, %c0_i32 : i32, i32
  }
}

</mosaic_0001>

<bundles_post_ra>
// kernel: tpu_custom_call.1
= control target key start
LH: loop header
LB: loop body
LE: loop exit
PB: predicated region body
PF: predicated region fallthrough
CT: control target
= control target key end

     0   :  { %8 = vsyncpa [#allocation3], 0  ;;  %s371_s0 = inlined_call_operand.hbm [shape: f32[32,32], index: 0, kind: input, shape index: {}]   ;;  %s372_s1 = inlined_call_operand.hbm [shape: f32[32,128], index: 1, kind: input, shape index: {}]   ;;  %s373_s2 = inlined_call_operand.vmem [shape: f32[1,128], index: 2, kind: input, shape index: {}]   ;;  %s374_s3 = inlined_call_operand.hbm [shape: f32[32,128], index: 3, kind: output, shape index: {}]  }
   0x1   :  { %9 = vsyncpa [#allocation6], 0 }
   0x2   :  { %10 = vsyncpa [#allocation4], 0  ;;  %s294_s12 = smov [#allocation2]   ;;  %s222_s16 = scalar_lea.hbm %s371_s0, 512 }
   0x3   :  { %s16_s13 = sshll.u32 %s294_s12, 4  ;;  %p223_p0 = scmp.ne.s32.totalorder %s371_s0, %s222_s16  ;;  %s17_s13 = int_to_ptr.vmem [resolvable:$true] %s16_s13 }
   0x4   :  { %p226_p1 = scmp.lt.u32.totalorder %s222_s16, %s371_s0 }
   0x6   :  { %p228_p2 = pnand %p226_p1, %p223_p0 }
   0x8   :  { %231 = shalt.err (!%p228_p2)
}
   0x9   :  { %s232_s21 = scalar_lea.vmem %s17_s13, 512  ;;  %p237_p4 = scmp.lt.s32.totalorder %s17_s13, %s17_s13 }
   0xa   :  { %p233_p3 = scmp.ne.s32.totalorder %s17_s13, %s232_s21  ;;  %p238_p5 = scmp.lt.s32.totalorder %s232_s21, %s232_s21 }
   0xc   :  { %p239_p6 = por %p238_p5, %p237_p4 }
   0xe   :  { %p240_p7 = pnand %p239_p6, %p233_p3 }
  0x10   :  { %243 = shalt.err (!%p240_p7)
}
  0x11   :  { %s295_s22 = smov 128   ;;  %s296_s23 = smov 8  }
  0x12   :  { %22 = dma.hbm_to_vmem [thread:$0]  %s371_s0, 512, %s17_s13, [#allocation3], %s295_s22, %s295_s22, %s296_s23  }
  0x13   :  { %s297_s26 = smov [#allocation5]   ;;  %s244_s30 = scalar_lea.hbm %s372_s1, 512 }
  0x14   :  { %s28_s27 = sshll.u32 %s297_s26, 4  ;;  %p245_p8 = scmp.ne.s32.totalorder %s372_s1, %s244_s30  ;;  %s29_s27 = int_to_ptr.vmem [resolvable:$true] %s28_s27 }
  0x15   :  { %p248_p9 = scmp.lt.u32.totalorder %s244_s30, %s372_s1 }
  0x17   :  { %p250_p10 = pnand %p248_p9, %p245_p8 }
  0x19   :  { %253 = shalt.err (!%p250_p10)
}
  0x1a   :  { %s254_s8 = scalar_lea.vmem %s29_s27, 512  ;;  %p259_p12 = scmp.lt.s32.totalorder %s29_s27, %s29_s27 }
  0x1b   :  { %p255_p11 = scmp.ne.s32.totalorder %s29_s27, %s254_s8  ;;  %p260_p13 = scmp.lt.s32.totalorder %s254_s8, %s254_s8 }
  0x1d   :  { %p261_p0 = por %p260_p13, %p259_p12 }
  0x1f   :  { %p262_p1 = pnand %p261_p0, %p255_p11 }
  0x21   :  { %265 = shalt.err (!%p262_p1)
}
  0x22   :  { %34 = dma.hbm_to_vmem [thread:$0]  %s372_s1, 512, %s29_s27, [#allocation6], %s295_s22, %s295_s22, %s296_s23  }
  0x23   :  { %288 = dma.done.wait [#allocation3], 512  }
  0x24   :  { %289 = vsyncadd [#allocation3], 4294966784 }
  0x25   :  { %290 = dma.done.wait [#allocation6], 512  }
  0x26   :  { %291 = vsyncadd [#allocation6], 4294966784  ;;  %vm58_vm0 = vcmask 261120   ;;  %v47_v0 = vld [vmem:[#allocation5] sm:$0xff]  ;;  %v48_v1 = vld [vmem:[#allocation5 + $0x8] sm:$0xff]  ;;  %s298_s11 = smov [#allocation7]  }
  0x27   :  { %v49_v2 = vld [vmem:[#allocation5 + $0x10] sm:$0xff]  ;;  %v205_v3 = vpack.c.bf16 %v48_v1, %v47_v0  ;;  %v50_v4 = vld [vmem:[#allocation5 + $0x18] sm:$0xff]  ;;  %v43_v5 = vld [vmem:[#allocation2] sm:$0xff]  ;;  %s165_s12 = sshll.u32 %s298_s11, 4  ;;  %s166_s12 = int_to_ptr.vmem [resolvable:$true] %s165_s12 }
  0x28   :  { %v45_v6 = vld [vmem:[#allocation2 + $0x10] sm:$0xff]  ;;  %v209_v7 = vpack.c.bf16 %v50_v4, %v49_v2  ;;  %199 = vmatprep.mubr.msk.f32.mxu0 %vm58_vm0, %v43_v5  ;;  %v44_v8 = vld [vmem:[#allocation2 + $0x8] sm:$0xff]  ;;  %v46_v9 = vld [vmem:[#allocation2 + $0x18] sm:$0xff]  ;;  %s266_s13 = scalar_lea.vmem %s166_s12, 512  ;;  %p271_p3 = scmp.lt.s32.totalorder %s166_s12, %s166_s12 }
  0x29   :  { %202 = vmatprep.mubr.msk.f32.mxu1 %vm58_vm0, %v45_v6  ;;  %206 = vmatprep.subr.bf16.mxu0 %v205_v3  ;;  %v178_v10 = vld [vmem:[%s373_s2] ss:$0 sm:$0xff]  ;;  %p267_p2 = scmp.ne.s32.totalorder %s166_s12, %s266_s13  ;;  %p272_p4 = scmp.lt.s32.totalorder %s266_s13, %s266_s13 }
  0x2a   :  { %213 = vmatprep.subr.bf16.mxu1 %v205_v3  ;;  %208 = vmatpush3.bf16.msra.mxu0 %v205_v3 }
  0x2b   :  { %215 = vmatpush3.bf16.msra.mxu1 %v205_v3  ;;  %210 = vmatprep.subr.bf16.mxu0 %v209_v7  ;;  %p273_p5 = por %p272_p4, %p271_p3 }
  0x2c   :  { %214 = vmatprep.subr.bf16.mxu1 %v209_v7 }
  0x2d   :  { %p274_p6 = pnand %p273_p5, %p267_p2 }
  0x2e   :  { %212 = vmatpush3.bf16.msra.mxu0 %v209_v7 }
  0x2f   :  { %216 = vmatpush3.bf16.msra.mxu1 %v209_v7 }
  0x31   :  { %200 = vmatmul.mubr.msk.f32.vlgmr.msra.gmra.mrb[0].mxu0 %vm58_vm0, %v44_v8 }
  0x32   :  { %203 = vmatmul.mubr.msk.f32.vlgmr.msra.gmra.mrb[0].mxu1 %vm58_vm0, %v46_v9 }
 0x104   :  { %v201_v11 = vpop.f32.mrb[0].mxu0 }
 0x105   :  { %v204_v12 = vpop.f32.mrb[0].mxu1  ;;  %v143_v13 = vadd.f32 %v201_v11, %v178_v10  ;;  %v137_v15 = vpop.f32.mrb[1].mxu0 }
 0x106   :  { %v153_v14 = vadd.f32 %v204_v12, %v178_v10  ;;  %v147_v16 = vpop.f32.mrb[1].mxu1  ;;  %v138_v17 = vadd.f32 %v178_v10, %v137_v15 }
 0x107   :  { %v148_v18 = vadd.f32 %v178_v10, %v147_v16  ;;  %157 = vst [vmem:[#allocation7 + $0x8] sm:$0xff] %v143_v13 }
 0x108   :  { %159 = vst [vmem:[#allocation7 + $0x18] sm:$0xff] %v153_v14  ;;  %156 = vst [vmem:[#allocation7] sm:$0xff] %v138_v17 }
 0x109   :  { %158 = vst [vmem:[#allocation7 + $0x10] sm:$0xff] %v148_v18 }
 0x10a   :  { %277 = shalt.err (!%p274_p6)
}
 0x10b   :  { %s278_s15 = scalar_lea.hbm %s374_s3, 512 }
 0x10c   :  { %p279_p7 = scmp.ne.s32.totalorder %s374_s3, %s278_s15  ;;  %p282_p8 = scmp.lt.u32.totalorder %s278_s15, %s374_s3 }
 0x10e   :  { %p284_p9 = pnand %p282_p8, %p279_p7 }
 0x110   :  { %287 = shalt.err (!%p284_p9)
}
 0x111   :  { %171 = dma.vmem_to_hbm [thread:$0]  %s166_s12, 512, %s374_s3, [#allocation4], %s295_s22, %s295_s22, %s296_s23  }
 0x112   :  { %292 = dma.done.wait [#allocation4], 512  }
 0x113   :  { %293 = vsyncadd [#allocation4], 4294966784 }
 0x114   :  { %175 = vsyncpa [#allocation3], 1 }
 0x115   :  { %176 = vsyncpa [#allocation6], 1 }
 0x116   :  { %177 = vsyncpa [#allocation4], 1 }

</bundles_post_ra>
